<compile_context>
chip_gen: v7x
topology: tpu7x:2x2x1
jax: 0.10.0
libtpu: 0.0.40
codegen_flags: <defaults>
</compile_context>

<pallas_src>
import jax
import jax.numpy as jnp
from jax.experimental import pallas as pl
from jax.experimental.pallas import tpu as pltpu


# ----------------------------- kernels -------------------------------------


def _squeeze_kernel(sel_ref, x_ref, o_ref):
    """x_ref: (C_BLK, H, W) -> o_ref: (C_BLK, 4, H/2, W/2)."""
    c_blk, h, w = x_ref.shape
    h2, w2 = h // 2, w // 2
    for fh in range(2):
        # Sublane-strided read: rows fh, fh+2, ... (cheap, no row-perm matmul).
        xs = x_ref[:, pl.ds(fh, h2, stride=2), :]              # (C_BLK, H2, W)
        xm = xs.reshape(c_blk * h2, w)                          # big MXU M dim
        for fw in range(2):
            # Lane de-interleave: pick columns 2j+fw via 0/1 selection matmul.
            z = jnp.dot(xm, sel_ref[fw],
                        preferred_element_type=jnp.float32)     # (C_BLK*H2, W2)
            o_ref[:, 2 * fh + fw] = z.reshape(c_blk, h2, w2).astype(o_ref.dtype)


def _unsqueeze_kernel(sct_ref, x_ref, o_ref):
    """x_ref: (C_BLK, 4, H, W) -> o_ref: (C_BLK, 2H, 2W)."""
    c_blk = x_ref.shape[0]
    h, w = x_ref.shape[2], x_ref.shape[3]
    for fh in range(2):
        x_even = x_ref[:, 2 * fh + 0].reshape(c_blk * h, w)     # fw = 0
        x_odd = x_ref[:, 2 * fh + 1].reshape(c_blk * h, w)      # fw = 1
        # Lane interleave: scatter to even / odd output columns and add.
        z = (jnp.dot(x_even, sct_ref[0], preferred_element_type=jnp.float32)
             + jnp.dot(x_odd, sct_ref[1], preferred_element_type=jnp.float32))
        z = z.reshape(c_blk, h, 2 * w).astype(o_ref.dtype)       # (C_BLK, H, 2W)
        # Sublane-strided store: rows fh, fh+2, ... of the (2H, 2W) plane.
        o_ref[:, pl.ds(fh, h, stride=2), :] = z


# --------------------------- helper builders --------------------------------


def _sel_mats(w, dtype):
    """sel[fw][wi, j] = 1 iff wi == 2*j + fw  (shape (2, w, w//2))."""
    w2 = w // 2
    wi = jnp.arange(w)[:, None]
    j = jnp.arange(w2)[None, :]
    return jnp.stack([(wi == 2 * j + fw) for fw in range(2)], axis=0).astype(dtype)


def _scatter_mats(w, dtype):
    """sct[fw][j, wo] = 1 iff wo == 2*j + fw  (shape (2, w, 2*w))."""
    j = jnp.arange(w)[:, None]
    wo = jnp.arange(2 * w)[None, :]
    return jnp.stack([(wo == 2 * j + fw) for fw in range(2)], axis=0).astype(dtype)


def _pad2_bytes(r, c, itemsize):
    # VMEM footprint of an (r, c) slab padded to (8, 128) tiles.
    return (-(-r // 8) * 8) * (-(-c // 128) * 128) * itemsize


def _pick_c_blk(total, unit_bytes, aux_bytes):
    """Largest divisor of `total` whose double-buffered blocks fit ~10 MiB.

    10 MiB keeps us under the 16 MiB v5e scoped-VMEM default (v6e: 32 MiB,
    v7x: 32 MiB scoped / 64 MiB physical).  We also keep >= 2 grid steps so
    both v7x TensorCores receive work on the "parallel" grid axis.
    """
    budget = 10 * 1024 * 1024
    per = 2 * unit_bytes                     # double-buffered in + out blocks
    cap = max(1, (budget - 2 * aux_bytes) // max(per, 1))
    cap = min(cap, total)
    if total >= 2:
        cap = min(cap, total // 2)
    cap = max(1, int(cap))
    cb = cap
    while total % cb:
        cb -= 1
    return cb


# ------------------------------ wrapper -------------------------------------


def squeeze_forward(x, c=None, rev=False):
    """Pallas equivalent of Squeeze.forward(x, c, rev) with factor=2 (NCHW)."""
    del c  # unused, exactly as in the PyTorch module
    n, ch, h, w = x.shape
    isz = jnp.dtype(x.dtype).itemsize

    if not rev:
        assert h % 2 == 0 and w % 2 == 0
        h2, w2 = h // 2, w // 2
        sel = _sel_mats(w, x.dtype)                              # (2, w, w2)
        total = n * ch
        unit = _pad2_bytes(h, w, isz) + 4 * _pad2_bytes(h2, w2, isz)
        aux = 2 * _pad2_bytes(w, w2, isz)
        cb = _pick_c_blk(total, unit, aux)

        xf = x.reshape(total, h, w)                              # free view
        y = pl.pallas_call(
            _squeeze_kernel,
            out_shape=jax.ShapeDtypeStruct((total, 4, h2, w2), x.dtype),
            grid=(total // cb,),
            in_specs=[
                pl.BlockSpec((2, w, w2), lambda i: (0, 0, 0)),   # fetched once
                pl.BlockSpec((cb, h, w), lambda i: (i, 0, 0)),
            ],
            out_specs=pl.BlockSpec((cb, 4, h2, w2), lambda i: (i, 0, 0, 0)),
            compiler_params=pltpu.CompilerParams(
                dimension_semantics=("parallel",)),
        )(sel, xf)
        # channel = 4*ci + 2*fh + fw, matching PyTorch's reshape/permute order.
        return y.reshape(n, 4 * ch, h2, w2)                      # free view

    else:
        assert ch % 4 == 0
        co = ch // 4
        ho, wo = 2 * h, 2 * w
        sct = _scatter_mats(w, x.dtype)                          # (2, w, 2w)
        total = n * co
        unit = 4 * _pad2_bytes(h, w, isz) + _pad2_bytes(ho, wo, isz)
        aux = 2 * _pad2_bytes(w, wo, isz)
        cb = _pick_c_blk(total, unit, aux)

        xf = x.reshape(total, 4, h, w)                           # free view
        y = pl.pallas_call(
            _unsqueeze_kernel,
            out_shape=jax.ShapeDtypeStruct((total, ho, wo), x.dtype),
            grid=(total // cb,),
            in_specs=[
                pl.BlockSpec((2, w, wo), lambda i: (0, 0, 0)),   # fetched once
                pl.BlockSpec((cb, 4, h, w), lambda i: (i, 0, 0, 0)),
            ],
            out_specs=pl.BlockSpec((cb, ho, wo), lambda i: (i, 0, 0)),
            compiler_params=pltpu.CompilerParams(
                dimension_semantics=("parallel",)),
        )(sct, xf)
        return y.reshape(n, co, ho, wo)                          # free view


def squeeze_jacobian(x, rev=False):
    # volume-preserving permutation -> log-det Jacobian is 0, as in PyTorch
    return 0.0


# ------------------------------- test ---------------------------------------


if __name__ == "__main__":
    key = jax.random.PRNGKey(0)
    n, ch, h, w = 2, 4, 16, 16
    x = jax.random.normal(key, (n, ch, h, w), dtype=jnp.float32)
    cond = jnp.zeros((n, 8), dtype=jnp.float32)  # unused conditioning arg

    # forward (rev=False)
    y = jax.block_until_ready(squeeze_forward(x, cond, rev=False))

    # pure-JAX reference mirroring the PyTorch reshape/permute exactly
    ref = x.reshape(n, ch, h // 2, 2, w // 2, 2)
    ref = jnp.transpose(ref, (0, 1, 3, 5, 2, 4))
    ref = ref.reshape(n, ch * 4, h // 2, w // 2)

    assert y.shape == (n, 4 * ch, h // 2, w // 2)
    assert jnp.allclose(y, ref, rtol=1e-6, atol=1e-6), "forward mismatch"

    # inverse (rev=True) round-trip check
    x_back = jax.block_until_ready(squeeze_forward(y, cond, rev=True))
    assert x_back.shape == x.shape
    assert jnp.allclose(x_back, x, rtol=1e-6, atol=1e-6), "rev mismatch"

    print("KERNEL_OK")
</pallas_src>

<mosaic_0001>
module attributes {stable_mosaic.version = 11 : i64} {
  func.func @_squeeze_kernel(%arg0: i32, %arg1: memref<2x16x8xf32, #tpu.memory_space<vmem>>, %arg2: memref<4x16x16xf32, #tpu.memory_space<vmem>>, %arg3: memref<4x4x8x8xf32, #tpu.memory_space<vmem>>) attributes {dimension_semantics = [#tpu.dimension_semantics<parallel>], iteration_bounds = array<i64: 2>, scalar_prefetch = 0 : i64, scratch_operands = 0 : i64, tpu.core_type = #tpu.core_type<tc>, window_params = [{pipeline_mode = #tpu.pipeline_mode<synchronous>, transform_indices = @transform_0, window_bounds = array<i64: 2, 16, 8>}, {transform_indices = @transform_1, window_bounds = array<i64: 4, 16, 16>}, {transform_indices = @transform_2, window_bounds = array<i64: 4, 4, 8, 8>}]} {
    %c0 = arith.constant 0 : index
    %c0_0 = arith.constant 0 : index
    %c0_1 = arith.constant 0 : index
    %0 = tpu.strided_load %arg2[%c0, %c0_0, %c0_1] {strides = array<i32: 1, 2, 1>} : memref<4x16x16xf32, #tpu.memory_space<vmem>>, vector<4x8x16xf32>
    %1 = vector.shape_cast %0 : vector<4x8x16xf32> to vector<32x16xf32>
    %c0_2 = arith.constant 0 : index
    %c0_3 = arith.constant 0 : index
    %c0_4 = arith.constant 0 : index
    %2 = vector.load %arg1[%c0_2, %c0_3, %c0_4] : memref<2x16x8xf32, #tpu.memory_space<vmem>>, vector<1x16x8xf32>
    %3 = vector.shape_cast %2 : vector<1x16x8xf32> to vector<16x8xf32>
    %cst = arith.constant dense<0.000000e+00> : vector<32x8xf32>
    %4 = tpu.matmul %1, %3, %cst {dimension_numbers = #tpu.dot_dimension_numbers<[1], [0], [0], [1], [0, 0, 1, 1], [], []>} : vector<32x16xf32>, vector<16x8xf32>, vector<32x8xf32> -> vector<32x8xf32>
    %5 = vector.shape_cast %4 : vector<32x8xf32> to vector<4x8x8xf32>
    %c0_5 = arith.constant 0 : index
    %c0_6 = arith.constant 0 : index
    %c0_7 = arith.constant 0 : index
    %c0_8 = arith.constant 0 : index
    %6 = vector.load %arg3[%c0_5, %c0_6, %c0_7, %c0_8] : memref<4x4x8x8xf32, #tpu.memory_space<vmem>>, vector<4x1x8x8xf32>
    %7 = vector.shape_cast %6 : vector<4x1x8x8xf32> to vector<4x8x8xf32>
    %8 = vector.shape_cast %5 : vector<4x8x8xf32> to vector<4x1x8x8xf32>
    tpu.vector_store %arg3[%c0_5, %c0_6, %c0_7, %c0_8], %8 {strides = array<i32>} : memref<4x4x8x8xf32, #tpu.memory_space<vmem>>, vector<4x1x8x8xf32>,
    %c1 = arith.constant 1 : index
    %c0_9 = arith.constant 0 : index
    %c0_10 = arith.constant 0 : index
    %9 = vector.load %arg1[%c1, %c0_9, %c0_10] : memref<2x16x8xf32, #tpu.memory_space<vmem>>, vector<1x16x8xf32>
    %10 = vector.shape_cast %9 : vector<1x16x8xf32> to vector<16x8xf32>
    %cst_11 = arith.constant dense<0.000000e+00> : vector<32x8xf32>
    %11 = tpu.matmul %1, %10, %cst_11 {dimension_numbers = #tpu.dot_dimension_numbers<[1], [0], [0], [1], [0, 0, 1, 1], [], []>} : vector<32x16xf32>, vector<16x8xf32>, vector<32x8xf32> -> vector<32x8xf32>
    %12 = vector.shape_cast %11 : vector<32x8xf32> to vector<4x8x8xf32>
    %c0_12 = arith.constant 0 : index
    %c1_13 = arith.constant 1 : index
    %c0_14 = arith.constant 0 : index
    %c0_15 = arith.constant 0 : index
    %13 = vector.load %arg3[%c0_12, %c1_13, %c0_14, %c0_15] : memref<4x4x8x8xf32, #tpu.memory_space<vmem>>, vector<4x1x8x8xf32>
    %14 = vector.shape_cast %13 : vector<4x1x8x8xf32> to vector<4x8x8xf32>
    %15 = vector.shape_cast %12 : vector<4x8x8xf32> to vector<4x1x8x8xf32>
    tpu.vector_store %arg3[%c0_12, %c1_13, %c0_14, %c0_15], %15 {strides = array<i32>} : memref<4x4x8x8xf32, #tpu.memory_space<vmem>>, vector<4x1x8x8xf32>,
    %c0_16 = arith.constant 0 : index
    %c1_17 = arith.constant 1 : index
    %c0_18 = arith.constant 0 : index
    %16 = tpu.strided_load %arg2[%c0_16, %c1_17, %c0_18] {strides = array<i32: 1, 2, 1>} : memref<4x16x16xf32, #tpu.memory_space<vmem>>, vector<4x8x16xf32>
    %17 = vector.shape_cast %16 : vector<4x8x16xf32> to vector<32x16xf32>
    %c0_19 = arith.constant 0 : index
    %c0_20 = arith.constant 0 : index
    %c0_21 = arith.constant 0 : index
    %18 = vector.load %arg1[%c0_19, %c0_20, %c0_21] : memref<2x16x8xf32, #tpu.memory_space<vmem>>, vector<1x16x8xf32>
    %19 = vector.shape_cast %18 : vector<1x16x8xf32> to vector<16x8xf32>
    %cst_22 = arith.constant dense<0.000000e+00> : vector<32x8xf32>
    %20 = tpu.matmul %17, %19, %cst_22 {dimension_numbers = #tpu.dot_dimension_numbers<[1], [0], [0], [1], [0, 0, 1, 1], [], []>} : vector<32x16xf32>, vector<16x8xf32>, vector<32x8xf32> -> vector<32x8xf32>
    %21 = vector.shape_cast %20 : vector<32x8xf32> to vector<4x8x8xf32>
    %c0_23 = arith.constant 0 : index
    %c2 = arith.constant 2 : index
    %c0_24 = arith.constant 0 : index
    %c0_25 = arith.constant 0 : index
    %22 = vector.load %arg3[%c0_23, %c2, %c0_24, %c0_25] : memref<4x4x8x8xf32, #tpu.memory_space<vmem>>, vector<4x1x8x8xf32>
    %23 = vector.shape_cast %22 : vector<4x1x8x8xf32> to vector<4x8x8xf32>
    %24 = vector.shape_cast %21 : vector<4x8x8xf32> to vector<4x1x8x8xf32>
    tpu.vector_store %arg3[%c0_23, %c2, %c0_24, %c0_25], %24 {strides = array<i32>} : memref<4x4x8x8xf32, #tpu.memory_space<vmem>>, vector<4x1x8x8xf32>,
    %c1_26 = arith.constant 1 : index
    %c0_27 = arith.constant 0 : index
    %c0_28 = arith.constant 0 : index
    %25 = vector.load %arg1[%c1_26, %c0_27, %c0_28] : memref<2x16x8xf32, #tpu.memory_space<vmem>>, vector<1x16x8xf32>
    %26 = vector.shape_cast %25 : vector<1x16x8xf32> to vector<16x8xf32>
    %cst_29 = arith.constant dense<0.000000e+00> : vector<32x8xf32>
    %27 = tpu.matmul %17, %26, %cst_29 {dimension_numbers = #tpu.dot_dimension_numbers<[1], [0], [0], [1], [0, 0, 1, 1], [], []>} : vector<32x16xf32>, vector<16x8xf32>, vector<32x8xf32> -> vector<32x8xf32>
    %28 = vector.shape_cast %27 : vector<32x8xf32> to vector<4x8x8xf32>
    %c0_30 = arith.constant 0 : index
    %c3 = arith.constant 3 : index
    %c0_31 = arith.constant 0 : index
    %c0_32 = arith.constant 0 : index
    %29 = vector.load %arg3[%c0_30, %c3, %c0_31, %c0_32] : memref<4x4x8x8xf32, #tpu.memory_space<vmem>>, vector<4x1x8x8xf32>
    %30 = vector.shape_cast %29 : vector<4x1x8x8xf32> to vector<4x8x8xf32>
    %31 = vector.shape_cast %28 : vector<4x8x8xf32> to vector<4x1x8x8xf32>
    tpu.vector_store %arg3[%c0_30, %c3, %c0_31, %c0_32], %31 {strides = array<i32>} : memref<4x4x8x8xf32, #tpu.memory_space<vmem>>, vector<4x1x8x8xf32>,
    return
  }
  func.func @transform_0(%arg0: i32) -> (i32, i32, i32) {
    %c0_i32 = arith.constant 0 : i32
    %c0_i32_0 = arith.constant 0 : i32
    %c0_i32_1 = arith.constant 0 : i32
    %c0_i32_2 = arith.constant 0 : i32
    return %c0_i32, %c0_i32_0, %c0_i32_1 : i32, i32, i32
  }
  func.func @transform_1(%arg0: i32) -> (i32, i32, i32) {
    %c0_i32 = arith.constant 0 : i32
    %c0_i32_0 = arith.constant 0 : i32
    %c0_i32_1 = arith.constant 0 : i32
    return %arg0, %c0_i32, %c0_i32_0 : i32, i32, i32
  }
  func.func @transform_2(%arg0: i32) -> (i32, i32, i32, i32) {
    %c0_i32 = arith.constant 0 : i32
    %c0_i32_0 = arith.constant 0 : i32
    %c0_i32_1 = arith.constant 0 : i32
    %c0_i32_2 = arith.constant 0 : i32
    return %arg0, %c0_i32, %c0_i32_0, %c0_i32_1 : i32, i32, i32, i32
  }
}

</mosaic_0001>

<bundles_post_ra>
// kernel: tpu_custom_call.1
= control target key start
LH: loop header
LB: loop body
LE: loop exit
PB: predicated region body
PF: predicated region fallthrough
CT: control target
= control target key end

     0   :  { %7 = vsyncpa [#allocation3], 0  ;;  %s1206_s0 = inlined_call_operand.vmem [shape: f32[2,16,8], index: 0, kind: input, shape index: {}]   ;;  %s1207_s1 = inlined_call_operand.hbm [shape: f32[8,16,16], index: 1, kind: input, shape index: {}]   ;;  %s1208_s2 = inlined_call_operand.hbm [shape: f32[8,4,8,8], index: 2, kind: output, shape index: {}]  }
   0x1   :  { %9 = vsyncpa [#allocation3 + $0x1], 0 }
   0x2   :  { %10 = vsyncpa [#allocation4], 0 }
   0x3   :  { %12 = vsyncpa [#allocation4 + $0x1], 0  ;;  %s970_s9 = smov 0   ;;  %s972_s10 = smov 0  }
   0x4   :  { %s974_s11 = smov 0   ;;  %s976_s12 = smov 0  }
   0x5 LB: > { %s991_s13 = sadd.s32 4294967295, %s947_s12   ;;  %s662_s14 = sadd.s32 4294967294, %s947_s12   ;;  %s947_s12 = sphi %s976_s12, %s1221_s12   ;;  %s943_s11 = sphi %s974_s11, %s1220_s11   ;;  %s939_s10 = sphi %s972_s10, %s1219_s10   ;;  %s935_s9 = sphi %s970_s9, %s1218_s9  }
   0x6   : > { %s995_s15 = sadd.s32 1, %s947_s12   ;;  %s46_s16 = sadd.s32 1, %s943_s11 }
   0x7   : > { %s43_s17 = ssub.s32 %s947_s12, %s995_s15  ;;  %p53_p0 = scmp.ne.s32.totalorder %s943_s11, %s939_s10 }
   0x8   : > { %p44_p1 = scmp.eq.s32.totalorder %s43_s17, 0  ;;  %p54_p2 = scmp.eq.s32.totalorder %s947_s12, 0 }
   0x9   : > { %p59_p3 = scmp.ne.s32.totalorder %s939_s10, %s935_s9  ;;  %p60_p4 = scmp.eq.s32.totalorder %s991_s13, 0 }
   0xa   : > { %s1007_s18 = scalar_select %p44_p1, %s943_s11, %s46_s16  }
   0xb   : > { %p1009_p5 = por %p54_p2, %p53_p0  ;;  %p1013_p6 = por %p60_p4, %p59_p3 }
   0xc   : > { %p83_p7 = scmp.eq.s32.totalorder %s991_s13, 1  ;;  %p89_p8 = scmp.eq.s32.totalorder %s662_s14, 1 }
   0xd   : > { %p813_p10 = scmp.lt.s32.totalorder %s947_s12, 2  ;;  %s112_s23 = sand.u32 1, %s943_s11  }
   0xe   : > { %p1020_p11 = por %p83_p7, %p53_p0  ;;  %p1024_p12 = por %p89_p8, %p59_p3 }
   0xf   : > { %s718_s24 = sshll.u32 %s947_s12, 10  ;;  %s665_s25 = sshll.u32 %s112_s23, 6 }
  0x10   : > { %s1212_s21 = scalar_select %p1020_p11, 1, 0 }
  0x11   : > { %s1213_s22 = scalar_select %p1024_p12, 1, 0 }
  0x12   : > { %s1033_s28 = scalar_lea.hbm %s1207_s1, %s718_s24  ;;  %s116_s29 = scalar_lea.vmem [#allocation2], %s665_s25 }
  0x13   : > { %s124_s30 = sshll.u32 %s116_s29, 4  ;;  %p1037_p13 = pnand %p813_p10, %p1009_p5  ;;  %s1041_s30 = int_to_ptr.vmem [resolvable:$true] %s124_s30 }
  0x14   : > { %s1043_s4 = scalar_lea.sflag [#allocation3], %s112_s23  ;;  %s851_s5 = scalar_lea.hbm %s1033_s28, 1024 }
  0x15   : > { %p852_p0 = scmp.ne.s32.totalorder %s1033_s28, %s851_s5  ;;  %p853_p1 = pneg %p1037_p13 }
  0x16   : > { %s856_s8 = scalar_lea.hbm %s1207_s1, 2048  ;;  %p857_p4 = scmp.lt.u32.totalorder %s1033_s28, %s1207_s1 }
  0x17   : > { %p854_p2 = pnand %p853_p1, %p852_p0  ;;  %p858_p5 = scmp.lt.u32.totalorder %s856_s8, %s851_s5 }
  0x18   : > { %p860_p8 = scmp.lt.u32.totalorder %s851_s5, %s1033_s28 }
  0x19   : > { %p855_p3 = pneg %p854_p2  ;;  %p859_p7 = por %p858_p5, %p857_p4 }
  0x1b   : > { %p861_p10 = por %p860_p8, %p859_p7 }
  0x1d   : > { %p862_p9 = pnand %p861_p10, %p855_p3 }
  0x1f   : > { %865 = shalt.err (!%p862_p9)
}
  0x20   : > { %s866_s17 = scalar_lea.vmem %s1041_s30, 1024  ;;  %s949_s19 = smov [#allocation2]  }
  0x21   : > { %p867_p0 = scmp.ne.s32.totalorder %s1041_s30, %s866_s17  ;;  %s871_s23 = sshll.u32 %s949_s19, 4  ;;  %s872_s23 = int_to_ptr.vmem [resolvable:$false] %s871_s23 }
  0x22   : > { %s873_s24 = scalar_lea.vmem %s872_s23, 2048  ;;  %p874_p11 = scmp.lt.s32.totalorder %s1041_s30, %s872_s23 }
  0x23   : > { %p869_p2 = pnand %p867_p0, %p853_p1  ;;  %p875_p4 = scmp.lt.s32.totalorder %s873_s24, %s866_s17 }
  0x25   : > { %p870_p12 = pneg %p869_p2  ;;  %p876_p5 = por %p875_p4, %p874_p11 }
  0x27   : > { %p877_p7 = pnand %p876_p5, %p870_p12 }
  0x29   : > { %880 = shalt.err (!%p877_p7)
}
  0x2a   : > { %s950_s25 = smov 128   ;;  %s951_s26 = smov 8  }
  0x2b   : > { %808 = dma.hbm_to_vmem [thread:$0]  (!%p1037_p13), %s1033_s28, 1024, %s1041_s30, %s1043_s4, %s950_s25, %s950_s25, %s951_s26  }
  0x2c   : > { %p669_p9 = scmp.ge.s32.totalorder %s947_s12, 1  ;;  %p132_p1 = scmp.lt.s32.totalorder %s947_s12, 3 }
  0x2e   : > { %p133_p3 = pnand %p669_p9, %p132_p1 }
  0x2f   : > { %s1074_s27 = sand.u32 (!%p133_p3), 1, %s939_s10  }
  0x30   : > { %136 = sbr.rel (%p133_p3) target bundleno = 304 (0x130), region = 28  ;;  %s670_s29 = sshll.u32 (!%p133_p3), %s1074_s27, 6 }
  0x31   : > { %s139_s5 = scalar_lea.sflag (!%p133_p3), [#allocation3], %s1074_s27  ;;  %s1078_s6 = scalar_lea.vmem (!%p133_p3), [#allocation2], %s670_s29 }
  0x37   : > { %926 = dma.done.wait (%p1013_p6), %s139_s5, 1024  }
  0x38   : > { %928 = vsyncadd (%p1013_p6), %s139_s5, 4294966272  ;;  %vm174_vm0 = vcmask 130048   ;;  %v172_v0 = vld [vmem:[%s1206_s0] sm:$0xff]  ;;  %v173_v1 = vld [vmem:[%s1206_s0 + $0x8] sm:$0xff]  ;;  %s671_s16 = sshll.u32 %s1074_s27, 7  ;;  %vm272_vm1 = vcmask 64512  }
  0x39   : > { %v679_v2 = vld [vmem:[%s1206_s0 + $0x10] sm:$0xff]  ;;  %v785_v3 = vpack.c.bf16 %v173_v1, %v172_v0  ;;  %v680_v4 = vld [vmem:[%s1206_s0 + $0x18] sm:$0xff]  ;;  %v165_v5 = vld [vmem:[%s1078_s6] ss:$2 sm:$0xff]  ;;  %s1121_s17 = scalar_lea.vmem [#allocation5], %s671_s16  ;;  %s720_s19 = sshll.u32 %s991_s13, 11 }
  0x3a   : > { %v789_v6 = vpack.c.bf16 %v680_v4, %v679_v2  ;;  %749 = vmatprep.mubr.msk.f32.mxu0 %vm174_vm0, %v165_v5  ;;  %759 = vmatprep.mubr.msk.f32.mxu1 %vm174_vm0, %v165_v5  ;;  %v672_v7 = vld [vmem:[%s1078_s6 + $0x10] ss:$2 sm:$0xff]  ;;  %v673_v8 = vld [vmem:[%s1078_s6 + $0x20] ss:$2 sm:$0xff]  ;;  %v689_v10 = vld [vmem:[%s1078_s6 + $0x1] ss:$2 sm:$0xff]  ;;  %s1152_s26 = scalar_lea.hbm %s1208_s2, %s720_s19 }
  0x3b   : > { %786 = vmatprep.subr.bf16.mxu0 %v785_v3  ;;  %v674_v9 = vld [vmem:[%s1078_s6 + $0x30] ss:$2 sm:$0xff]  ;;  %v690_v11 = vld [vmem:[%s1078_s6 + $0x11] ss:$2 sm:$0xff]  ;;  %v691_v12 = vld [vmem:[%s1078_s6 + $0x21] ss:$2 sm:$0xff] }
  0x3c   : > { %790 = vmatprep.subr.bf16.mxu1 %v789_v6  ;;  %788 = vmatpush3.bf16.msra.mxu0 %v785_v3  ;;  %v692_v13 = vld [vmem:[%s1078_s6 + $0x31] ss:$2 sm:$0xff]  ;;  %s589_s23 = sshll.u32 %s1121_s17, 4  ;;  %s575_s13 = scalar_lea.sflag [#allocation4], %s1074_s27  ;;  %s1154_s23 = int_to_ptr.vmem [resolvable:$true] %s589_s23 }
  0x3d   : > { %792 = vmatpush3.bf16.msra.mxu1 %v789_v6  ;;  %794 = vmatprep.subr.bf16.mxu0 %v785_v3  ;;  %s881_s29 = scalar_lea.vmem %s1154_s23, 2048  ;;  %p1215_p11 = scmp.ne.s32.totalorder %s1212_s21, 0 }
  0x3e   : > { %798 = vmatprep.subr.bf16.mxu1 %v789_v6  ;;  %p882_p6 = scmp.ne.s32.totalorder %s1154_s23, %s881_s29  ;;  %s952_s5 = smov [#allocation5]  }
  0x3f   : > { %750 = vmatmul.mubr.msk.f32.vlgmr.msra.gmra.mrb[0].mxu0 %vm174_vm0, %v672_v7  ;;  %s885_s6 = sshll.u32 %s952_s5, 4  ;;  %s886_s6 = int_to_ptr.vmem [resolvable:$false] %s885_s6 }
  0x40   : > { %760 = vmatmul.mubr.msk.f32.vlgmr.msra.gmra.mrb[0].mxu1 %vm174_vm0, %v672_v7  ;;  %796 = vmatpush3.bf16.msra.mxu0 %v785_v3  ;;  %p883_p12 = pnand %p882_p6, %p1215_p11  ;;  %s887_s28 = scalar_lea.vmem %s886_s6, 4096 }
  0x41   : > { %800 = vmatpush3.bf16.msra.mxu1 %v789_v6  ;;  %752 = vmatprep.mubr.msk.f32.mxu0 %vm174_vm0, %v673_v8  ;;  %p888_p8 = scmp.lt.s32.totalorder %s1154_s23, %s886_s6  ;;  %p889_p10 = scmp.lt.s32.totalorder %s887_s28, %s881_s29 }
  0x42   : > { %762 = vmatprep.mubr.msk.f32.mxu1 %vm174_vm0, %v673_v8  ;;  %p884_p13 = pneg %p883_p12 }
  0x43   : > { %753 = vmatmul.mubr.msk.f32.gmra.mrb[2].mxu0 %vm174_vm0, %v674_v9  ;;  %p890_p0 = por %p889_p10, %p888_p8 }
  0x44   : > { %763 = vmatmul.mubr.msk.f32.gmra.mrb[2].mxu1 %vm174_vm0, %v674_v9  ;;  %769 = vmatprep.mubr.msk.f32.mxu0 %vm174_vm0, %v689_v10 }
  0x45   : > { %779 = vmatprep.mubr.msk.f32.mxu1 %vm174_vm0, %v689_v10  ;;  %p891_p2 = pnand %p890_p0, %p884_p13 }
  0x47   : > { %770 = vmatmul.mubr.msk.f32.vlgmr.msra.gmra.mrb[4].mxu0 %vm174_vm0, %v690_v11 }
  0x48   : > { %780 = vmatmul.mubr.msk.f32.vlgmr.msra.gmra.mrb[4].mxu1 %vm174_vm0, %v690_v11  ;;  %772 = vmatprep.mubr.msk.f32.mxu0 %vm174_vm0, %v691_v12 }
  0x49   : > { %782 = vmatprep.mubr.msk.f32.mxu1 %vm174_vm0, %v691_v12 }
  0x4b   : > { %773 = vmatmul.mubr.msk.f32.gmra.mrb[6].mxu0 %vm174_vm0, %v692_v13 }
  0x4c   : > { %783 = vmatmul.mubr.msk.f32.gmra.mrb[6].mxu1 %vm174_vm0, %v692_v13 }
 0x112   : > { %v751_v14 = vpop.f32.mrb[0].mxu0 }
 0x113   : > { %274 = vst.msk [vmem:[%s1121_s17 + $0x20] sm:$0xff] %vm272_vm1, %v751_v14  ;;  %v761_v15 = vpop.f32.mrb[0].mxu1  ;;  %v253_v16 = vpop.f32.mrb[1].mxu0 }
 0x114   : > { %686 = vst.msk [vmem:[%s1121_s17 + $0x28] sm:$0xff] %vm272_vm1, %v761_v15  ;;  %273 = vst.msk [vmem:[%s1121_s17] sm:$0xff] %vm272_vm1, %v253_v16  ;;  %v346_v17 = vpop.f32.mrb[1].mxu1 }
 0x115   : > { %685 = vst.msk [vmem:[%s1121_s17 + $0x8] sm:$0xff] %vm272_vm1, %v346_v17 }
 0x116   : > { %v754_v18 = vpop.f32.mrb[2].mxu0 }
 0x117   : > { %276 = vst.msk [vmem:[%s1121_s17 + $0x60] sm:$0xff] %vm272_vm1, %v754_v18  ;;  %v764_v19 = vpop.f32.mrb[2].mxu1  ;;  %v263_v20 = vpop.f32.mrb[3].mxu0 }
 0x118   : > { %688 = vst.msk [vmem:[%s1121_s17 + $0x68] sm:$0xff] %vm272_vm1, %v764_v19  ;;  %275 = vst.msk [vmem:[%s1121_s17 + $0x40] sm:$0xff] %vm272_vm1, %v263_v20  ;;  %v356_v21 = vpop.f32.mrb[3].mxu1 }
 0x119   : > { %687 = vst.msk [vmem:[%s1121_s17 + $0x48] sm:$0xff] %vm272_vm1, %v356_v21 }
 0x11a   : > { %v771_v22 = vpop.f32.mrb[4].mxu0 }
 0x11b   : > { %698 = vst.msk [vmem:[%s1121_s17 + $0x30] sm:$0xff] %vm272_vm1, %v771_v22  ;;  %v781_v23 = vpop.f32.mrb[4].mxu1  ;;  %v458_v24 = vpop.f32.mrb[5].mxu0 }
 0x11c   : > { %708 = vst.msk [vmem:[%s1121_s17 + $0x38] sm:$0xff] %vm272_vm1, %v781_v23  ;;  %697 = vst.msk [vmem:[%s1121_s17 + $0x10] sm:$0xff] %vm272_vm1, %v458_v24  ;;  %v550_v25 = vpop.f32.mrb[5].mxu1 }
 0x11d   : > { %707 = vst.msk [vmem:[%s1121_s17 + $0x18] sm:$0xff] %vm272_vm1, %v550_v25 }
 0x11e   : > { %v774_v26 = vpop.f32.mrb[6].mxu0 }
 0x11f   : > { %700 = vst.msk [vmem:[%s1121_s17 + $0x70] sm:$0xff] %vm272_vm1, %v774_v26  ;;  %v784_v27 = vpop.f32.mrb[6].mxu1  ;;  %v468_v28 = vpop.f32.mrb[7].mxu0 }
 0x120   : > { %710 = vst.msk [vmem:[%s1121_s17 + $0x78] sm:$0xff] %vm272_vm1, %v784_v27  ;;  %699 = vst.msk [vmem:[%s1121_s17 + $0x50] sm:$0xff] %vm272_vm1, %v468_v28  ;;  %v560_v29 = vpop.f32.mrb[7].mxu1 }
 0x121   : > { %709 = vst.msk [vmem:[%s1121_s17 + $0x58] sm:$0xff] %vm272_vm1, %v560_v29 }
 0x122   : > { %894 = shalt.err (!%p891_p2)
}
 0x123   : > { %s895_s30 = scalar_lea.hbm %s1152_s26, 2048  ;;  %s899_s7 = scalar_lea.hbm %s1208_s2, 4096 }
 0x124   : > { %p896_p4 = scmp.ne.s32.totalorder %s1152_s26, %s895_s30  ;;  %p900_p9 = scmp.lt.u32.totalorder %s1152_s26, %s1208_s2 }
 0x125   : > { %p901_p1 = scmp.lt.u32.totalorder %s899_s7, %s895_s30  ;;  %p903_p6 = scmp.lt.u32.totalorder %s895_s30, %s1152_s26 }
 0x126   : > { %p897_p5 = pnand %p896_p4, %p1215_p11 }
 0x127   : > { %p902_p3 = por %p901_p1, %p900_p9 }
 0x128   : > { %p898_p7 = pneg %p897_p5 }
 0x129   : > { %p904_p12 = por %p903_p6, %p902_p3 }
 0x12b   : > { %p905_p13 = pnand %p904_p12, %p898_p7 }
 0x12d   : > { %908 = shalt.err (!%p905_p13)
}
 0x12e   : > { %s953_s20 = smov 128   ;;  %s954_s16 = smov 8  }
 0x12f   : > { %803 = dma.vmem_to_hbm [thread:$0]  (%p1215_p11), %s1154_s23, 2048, %s1152_s26, %s575_s13, %s953_s20, %s953_s20, %s954_s16  }
 0x130 PF: > { %s604_s17 = sand.u32 1, %s935_s9   ;;  %p1216_p8 = scmp.ne.s32.totalorder %s1213_s22, 0 }
 0x131   : > { %p1217_p10 = scmp.ge.s32.totalorder %s947_s12, 2  ;;  %s605_s19 = scalar_lea.sflag [#allocation4], %s604_s17 }
 0x133   : > { %p810_p0 = pnand %p1217_p10, %p1216_p8 }
 0x135   : > { %930 = dma.done.wait (!%p810_p0), %s605_s19, 2048  }
 0x136   : > { %932 = vsyncadd (!%p810_p0), %s605_s19, 4294965248  ;;  %p15_p2 = scmp.ge.s32.totalorder %s995_s15, 4   ;;  %s1218_s9 = smov %s939_s10 }
 0x137   : > { %s1219_s10 = smov %s943_s11  ;;  %s1220_s11 = smov %s1007_s18 }
 0x138   : > { %s1221_s12 = smov %s995_s15  ;;  %17 = sbr.rel (!%p15_p2) target bundleno = 5 (0x5), region = 84 }
 0x13f   :  { %610 = vsyncpa [#allocation3], 1 }
 0x140   :  { %612 = vsyncpa [#allocation3 + $0x1], 1 }
 0x141   :  { %613 = vsyncpa [#allocation4], 1 }
 0x142   :  { %615 = vsyncpa [#allocation4 + $0x1], 1 }

</bundles_post_ra>
